<compile_context>
chip_gen: v7x
topology: tpu7x:2x2x1
jax: 0.10.0
libtpu: 0.0.40
codegen_flags: <defaults>
</compile_context>

<pallas_src>
import functools

import jax
import jax.numpy as jnp
from jax.experimental import pallas as pl
from jax.experimental.pallas import tpu as pltpu

MARGIN = 1.0
ACC_ROWS = 8               # sublane height of the per-slice vector accumulator
PREF_CHUNK_GROUPS = 4      # streamed inner chunk = 4 * 8 = 32 rows


def _cdiv(a, b):
    return -(-a // b)


def _chip_defaults():
    """(num_slices, per-input block bytes, vmem_limit_bytes) by TPU generation."""
    kind = ""
    try:
        kind = (jax.devices()[0].device_kind or "").lower()
    except Exception:
        pass
    if "v7" in kind or "tpu7" in kind:
        # 2 TensorCores, 64 MiB physical VMEM -> keep the limit well under it.
        # TODO(synk): confirm the "parallel" grid axis shards across both v7x
        # TensorCores in this toolchain; otherwise switch to CORE_PARALLEL.
        return 2, 6 * 1024 * 1024, 48 * 1024 * 1024
    if "v6" in kind:
        return 1, 6 * 1024 * 1024, 64 * 1024 * 1024
    if "v5" in kind and ("lite" in kind or "v5e" in kind):
        return 1, 2 * 1024 * 1024, 32 * 1024 * 1024
    if "v4" in kind or "v5" in kind:       # v4 / v5p megacore (2 TCs)
        return 2, 4 * 1024 * 1024, 32 * 1024 * 1024
    return 1, 4 * 1024 * 1024, 32 * 1024 * 1024


def _hinge_kernel(x_ref, t_ref, o_ref, *, rows, tile_rows, chunk_rows,
                  k_steps, lane, needs_mask):
    k = pl.program_id(1)   # reduction step (output block is k-invariant)

    @pl.when(k == 0)
    def _():
        o_ref[...] = jnp.zeros_like(o_ref)

    n_chunks = tile_rows // chunk_rows
    if n_chunks % 4 == 0:
        unroll = 4
    elif n_chunks % 2 == 0:
        unroll = 2
    else:
        unroll = 1

    def tile_partial(masked, row_start):
        # Streamed reduction: fold (chunk_rows, lane) slices into an
        # (ACC_ROWS, lane) f32 accumulator carried in vregs, avoiding a
        # full-tile f32 intermediate in VMEM.
        def body(g, acc):
            r0 = pl.multiple_of(g * chunk_rows, chunk_rows)
            xv = x_ref[pl.ds(r0, chunk_rows), :].astype(jnp.float32)
            tv = t_ref[pl.ds(r0, chunk_rows), :].astype(jnp.float32)
            h = jnp.maximum(jnp.float32(MARGIN) - xv * tv, jnp.float32(0.0))
            if masked:
                # Mask rows past the logical end (ragged tail / clamped OOB
                # block). Keep the where LAST so garbage (NaN/Inf) in the
                # out-of-bounds region is always overridden.
                ids = row_start + r0 + jax.lax.broadcasted_iota(
                    jnp.int32, h.shape, 0)
                h = jnp.where(ids < rows, h, jnp.float32(0.0))
            return acc + h.reshape(
                chunk_rows // ACC_ROWS, ACC_ROWS, lane).sum(axis=0)

        init = jnp.zeros((ACC_ROWS, lane), jnp.float32)
        return jax.lax.fori_loop(0, n_chunks, body, init, unroll=unroll)

    if needs_mask:
        # Tail-only masking: full blocks take the cheaper unmasked path.
        i = pl.program_id(0)
        row_start = (i * k_steps + k) * tile_rows
        is_full = row_start + tile_rows <= rows

        @pl.when(is_full)
        def _():
            o_ref[...] += tile_partial(False, row_start)

        @pl.when(jnp.logical_not(is_full))
        def _():
            o_ref[...] += tile_partial(True, row_start)
    else:
        o_ref[...] += tile_partial(False, 0)


def hinge_loss(x, target):
    """mean(relu(1 - x * target)) computed in a Pallas TPU kernel."""
    assert x.shape == target.shape, (x.shape, target.shape)
    num_slices, block_bytes, vmem_limit = _chip_defaults()

    orig_count = x.size
    x_flat = x.reshape(-1)
    t_flat = target.reshape(-1)
    total = orig_count

    # ---- lane-dense layout: last dim a multiple of 128 -----------------------
    lane = 128
    for cand in (512, 256):
        if total % cand == 0 and total // cand >= ACC_ROWS:
            lane = cand
            break
    if total % lane != 0 or total // lane < ACC_ROWS:
        # Rare edge case: element count not a multiple of 128 (or tiny array).
        # Pad with hinge-neutral values (x = margin+1, t = 1 -> relu == 0);
        # the mean below still divides by the original element count.
        padded_total = max(_cdiv(total, lane) * lane, ACC_ROWS * lane)
        pad = padded_total - total
        x_flat = jnp.concatenate(
            [x_flat, jnp.full((pad,), MARGIN + 1.0, dtype=x_flat.dtype)])
        t_flat = jnp.concatenate(
            [t_flat, jnp.ones((pad,), dtype=t_flat.dtype)])
        total = padded_total

    rows = total // lane
    x2 = x_flat.reshape(rows, lane)
    t2 = t_flat.reshape(rows, lane)

    # ---- tile sizing: large, bandwidth-friendly row tiles --------------------
    itemsize = max(jnp.dtype(x.dtype).itemsize, jnp.dtype(target.dtype).itemsize)
    chunk_pref = ACC_ROWS * PREF_CHUNK_GROUPS
    budget_rows = block_bytes // (lane * itemsize)
    budget_rows = max(ACC_ROWS, (budget_rows // chunk_pref) * chunk_pref)
    tile_rows = min(budget_rows, _cdiv(rows, ACC_ROWS) * ACC_ROWS)

    num_blocks = _cdiv(rows, tile_rows)
    num_slices = max(1, min(num_slices, num_blocks))
    k_steps = _cdiv(num_blocks, num_slices)

    if num_slices > 1:
        # Balance the slices (both TensorCores finish together) instead of
        # giving one slice a clamped, fully wasted trailing block.
        scheduled = num_slices * k_steps
        tile_rows = _cdiv(_cdiv(rows, scheduled), ACC_ROWS) * ACC_ROWS
        num_blocks = _cdiv(rows, tile_rows)

    # Streamed-chunk size must divide tile_rows exactly.
    chunk_rows = ACC_ROWS
    for cg in (PREF_CHUNK_GROUPS, 2):
        if tile_rows % (cg * ACC_ROWS) == 0:
            chunk_rows = cg * ACC_ROWS
            break

    scheduled = num_slices * k_steps
    needs_mask = scheduled * tile_rows != rows
    last_block = num_blocks - 1
    clamp = scheduled > num_blocks   # fully-OOB block indices exist -> clamp

    def row_block_map(i, k):
        b = i * k_steps + k
        if clamp:                      # static (trace-time) check
            b = jnp.minimum(b, last_block)
        return (b, 0)

    kernel = functools.partial(
        _hinge_kernel, rows=rows, tile_rows=tile_rows, chunk_rows=chunk_rows,
        k_steps=k_steps, lane=lane, needs_mask=needs_mask)

    partials = pl.pallas_call(
        kernel,
        out_shape=jax.ShapeDtypeStruct((num_slices * ACC_ROWS, lane), jnp.float32),
        grid_spec=pltpu.PrefetchScalarGridSpec(
            num_scalar_prefetch=0,
            grid=(num_slices, k_steps),
            in_specs=[
                pl.BlockSpec((tile_rows, lane), row_block_map),
                pl.BlockSpec((tile_rows, lane), row_block_map),
            ],
            out_specs=pl.BlockSpec((ACC_ROWS, lane), lambda i, k: (i, 0)),
        ),
        compiler_params=pltpu.CompilerParams(
            dimension_semantics=("parallel", "arbitrary"),
            vmem_limit_bytes=vmem_limit,
        ),
    )(x2, t2)

    # Tiny final collapse (num_slices*8 x lane f32) + mean scaling.
    return jnp.sum(partials) * jnp.float32(1.0 / orig_count)


def hinge_loss_ref(x, target):
    xf = x.astype(jnp.float32)
    tf = target.astype(jnp.float32)
    return jnp.mean(jnp.maximum(jnp.float32(MARGIN) - xf * tf, 0.0))


if __name__ == "__main__":
    key = jax.random.PRNGKey(0)
    k1, k2, k3, k4, k5, k6 = jax.random.split(key, 6)

    # Test 1: small (batch, num_classes) f32 scores with +/-1 labels.
    N, C = 16, 128
    x = jax.random.normal(k1, (N, C), dtype=jnp.float32)
    t = jnp.where(jax.random.bernoulli(k2, 0.5, (N, C)), 1.0, -1.0).astype(jnp.float32)
    out = jax.block_until_ready(hinge_loss(x, t))
    ref = hinge_loss_ref(x, t)
    assert jnp.allclose(out, ref, rtol=1e-5, atol=1e-6), (out, ref)

    # Test 2: ragged row count, narrow C (lane-densified), bf16 inputs.
    N2, C2 = 20, 64
    x2 = jax.random.normal(k3, (N2, C2), dtype=jnp.bfloat16)
    t2 = jnp.where(jax.random.bernoulli(k4, 0.5, (N2, C2)), 1.0, -1.0).astype(jnp.bfloat16)
    out2 = jax.block_until_ready(hinge_loss(x2, t2))
    ref2 = hinge_loss_ref(x2, t2)
    assert jnp.allclose(out2, ref2, rtol=1e-5, atol=1e-5), (out2, ref2)

    # Test 3: 1-D input whose size is not a multiple of 128 (padding path).
    N3 = 1000
    x3 = jax.random.normal(k5, (N3,), dtype=jnp.float32)
    t3 = jnp.where(jax.random.bernoulli(k6, 0.5, (N3,)), 1.0, -1.0).astype(jnp.float32)
    out3 = jax.block_until_ready(hinge_loss(x3, t3))
    ref3 = hinge_loss_ref(x3, t3)
    assert jnp.allclose(out3, ref3, rtol=1e-5, atol=1e-6), (out3, ref3)

    print("KERNEL_OK")
</pallas_src>

<mosaic_0001>
module attributes {stable_mosaic.version = 11 : i64} {
  func.func @_hinge_kernel(%arg0: i32, %arg1: i32, %arg2: memref<8x256xf32, #tpu.memory_space<vmem>>, %arg3: memref<8x256xf32, #tpu.memory_space<vmem>>, %arg4: memref<8x256xf32, #tpu.memory_space<vmem>>) attributes {dimension_semantics = [#tpu.dimension_semantics<parallel>, #tpu.dimension_semantics<arbitrary>], iteration_bounds = array<i64: 1, 1>, scalar_prefetch = 0 : i64, scratch_operands = 0 : i64, tpu.core_type = #tpu.core_type<tc>, window_params = [{transform_indices = @transform_0, window_bounds = array<i64: 8, 256>}, {transform_indices = @transform_1, window_bounds = array<i64: 8, 256>}, {transform_indices = @transform_2, window_bounds = array<i64: 8, 256>}]} {
    %c0_i32 = arith.constant 0 : i32
    %0 = arith.cmpi eq, %arg1, %c0_i32 : i32
    %1 = arith.extui %0 : i1 to i32
    %c0_i32_0 = arith.constant 0 : i32
    %2 = arith.cmpi ne, %1, %c0_i32_0 : i32
    scf.if %2 {
      %cst_10 = arith.constant 0.000000e+00 : f32
      %21 = vector.broadcast %cst_10 : f32 to vector<8x256xf32>
      %c0_11 = arith.constant 0 : index
      %c0_12 = arith.constant 0 : index
      %22 = vector.load %arg4[%c0_11, %c0_12] : memref<8x256xf32, #tpu.memory_space<vmem>>, vector<8x256xf32>
      tpu.vector_store %arg4[%c0_11, %c0_12], %21 {strides = array<i32>} : memref<8x256xf32, #tpu.memory_space<vmem>>, vector<8x256xf32>,
    } else {
    }
    %c0 = arith.constant 0 : index
    %c0_1 = arith.constant 0 : index
    %3 = vector.load %arg4[%c0, %c0_1] : memref<8x256xf32, #tpu.memory_space<vmem>>, vector<8x256xf32>
    %cst = arith.constant 0.000000e+00 : f32
    %4 = vector.broadcast %cst : f32 to vector<8x256xf32>
    %c0_i32_2 = arith.constant 0 : i32
    %c8_i32 = arith.constant 8 : i32
    %5 = arith.muli %c0_i32_2, %c8_i32 : i32
    %6 = tpu.assume_multiple %5, 8 : i32
    %7 = arith.index_cast %6 : i32 to index
    %c0_3 = arith.constant 0 : index
    %8 = vector.load %arg2[%7, %c0_3] : memref<8x256xf32, #tpu.memory_space<vmem>>, vector<8x256xf32>
    %9 = arith.index_cast %6 : i32 to index
    %c0_4 = arith.constant 0 : index
    %10 = vector.load %arg3[%9, %c0_4] : memref<8x256xf32, #tpu.memory_space<vmem>>, vector<8x256xf32>
    %11 = arith.mulf %8, %10 : vector<8x256xf32>
    %cst_5 = arith.constant 1.000000e+00 : f32
    %12 = vector.broadcast %cst_5 : f32 to vector<8x256xf32>
    %13 = arith.subf %12, %11 : vector<8x256xf32>
    %cst_6 = arith.constant 0.000000e+00 : f32
    %14 = vector.broadcast %cst_6 : f32 to vector<8x256xf32>
    %15 = arith.maximumf %13, %14 : vector<8x256xf32>
    %16 = vector.shape_cast %15 : vector<8x256xf32> to vector<1x8x256xf32>
    %cst_7 = arith.constant dense<0.000000e+00> : vector<8x256xf32>
    %17 = vector.multi_reduction <add>, %16, %cst_7 [0] : vector<1x8x256xf32> to vector<8x256xf32>
    %18 = arith.addf %4, %17 : vector<8x256xf32>
    %c1_i32 = arith.constant 1 : i32
    %19 = arith.addf %3, %18 : vector<8x256xf32>
    %c0_8 = arith.constant 0 : index
    %c0_9 = arith.constant 0 : index
    %20 = vector.load %arg4[%c0_8, %c0_9] : memref<8x256xf32, #tpu.memory_space<vmem>>, vector<8x256xf32>
    tpu.vector_store %arg4[%c0_8, %c0_9], %19 {strides = array<i32>} : memref<8x256xf32, #tpu.memory_space<vmem>>, vector<8x256xf32>,
    return
  }
  func.func @transform_0(%arg0: i32, %arg1: i32) -> (i32, i32) {
    %c1_i32 = arith.constant 1 : i32
    %0 = arith.muli %arg0, %c1_i32 : i32
    %1 = arith.addi %0, %arg1 : i32
    %c0_i32 = arith.constant 0 : i32
    %c0_i32_0 = arith.constant 0 : i32
    return %1, %c0_i32 : i32, i32
  }
  func.func @transform_1(%arg0: i32, %arg1: i32) -> (i32, i32) {
    %c1_i32 = arith.constant 1 : i32
    %0 = arith.muli %arg0, %c1_i32 : i32
    %1 = arith.addi %0, %arg1 : i32
    %c0_i32 = arith.constant 0 : i32
    %c0_i32_0 = arith.constant 0 : i32
    return %1, %c0_i32 : i32, i32
  }
  func.func @transform_2(%arg0: i32, %arg1: i32) -> (i32, i32) {
    %c0_i32 = arith.constant 0 : i32
    %c0_i32_0 = arith.constant 0 : i32
    return %arg0, %c0_i32 : i32, i32
  }
}

</mosaic_0001>

<bundles_post_ra>
// kernel: tpu_custom_call.1
= control target key start
LH: loop header
LB: loop body
LE: loop exit
PB: predicated region body
PF: predicated region fallthrough
CT: control target
= control target key end

     0   :  { %7 = vsyncpa [#allocation3], 0  ;;  %s223_s0 = inlined_call_operand.hbm [shape: f32[8,256], index: 0, kind: input, shape index: {}]   ;;  %s224_s1 = inlined_call_operand.hbm [shape: f32[8,256], index: 1, kind: input, shape index: {}]   ;;  %s225_s2 = inlined_call_operand.hbm [shape: f32[8,256], index: 2, kind: output, shape index: {}]  }
   0x1   :  { %8 = vsyncpa [#allocation6], 0 }
   0x2   :  { %9 = vsyncpa [#allocation4], 0  ;;  %s169_s9 = smov [#allocation2]   ;;  %s170_s11 = smov [#allocation5]  }
   0x3   :  { %s20_s10 = sshll.u32 %s169_s9, 4  ;;  %s34_s12 = sshll.u32 %s170_s11, 4  ;;  %s21_s10 = int_to_ptr.vmem [resolvable:$true] %s20_s10  ;;  %s35_s12 = int_to_ptr.vmem [resolvable:$true] %s34_s12 }
   0x4   :  { %s97_s15 = scalar_lea.hbm %s223_s0, 256 }
   0x5   :  { %p98_p0 = scmp.ne.s32.totalorder %s223_s0, %s97_s15  ;;  %p101_p1 = scmp.lt.u32.totalorder %s97_s15, %s223_s0 }
   0x7   :  { %p103_p2 = pnand %p101_p1, %p98_p0 }
   0x9   :  { %106 = shalt.err (!%p103_p2)
}
   0xa   :  { %s107_s20 = scalar_lea.vmem %s21_s10, 256  ;;  %p112_p4 = scmp.lt.s32.totalorder %s21_s10, %s21_s10 }
   0xb   :  { %p108_p3 = scmp.ne.s32.totalorder %s21_s10, %s107_s20  ;;  %p113_p5 = scmp.lt.s32.totalorder %s107_s20, %s107_s20 }
   0xd   :  { %p114_p6 = por %p113_p5, %p112_p4 }
   0xf   :  { %p115_p7 = pnand %p114_p6, %p108_p3 }
  0x11   :  { %118 = shalt.err (!%p115_p7)
}
  0x12   :  { %23 = dma.hbm_to_vmem [thread:$0]  %s223_s0, 256, %s21_s10, [#allocation3]  }
  0x13   :  { %s119_s25 = scalar_lea.hbm %s224_s1, 256 }
  0x14   :  { %p120_p8 = scmp.ne.s32.totalorder %s224_s1, %s119_s25  ;;  %p123_p9 = scmp.lt.u32.totalorder %s119_s25, %s224_s1 }
  0x16   :  { %p125_p10 = pnand %p123_p9, %p120_p8 }
  0x18   :  { %128 = shalt.err (!%p125_p10)
}
  0x19   :  { %s129_s30 = scalar_lea.vmem %s35_s12, 256  ;;  %p134_p12 = scmp.lt.s32.totalorder %s35_s12, %s35_s12 }
  0x1a   :  { %p130_p11 = scmp.ne.s32.totalorder %s35_s12, %s129_s30  ;;  %p135_p13 = scmp.lt.s32.totalorder %s129_s30, %s129_s30 }
  0x1c   :  { %p136_p0 = por %p135_p13, %p134_p12 }
  0x1e   :  { %p137_p1 = pnand %p136_p0, %p130_p11 }
  0x20   :  { %140 = shalt.err (!%p137_p1)
}
  0x21   :  { %37 = dma.hbm_to_vmem [thread:$0]  %s224_s1, 256, %s35_s12, [#allocation6]  }
  0x22   :  { %163 = dma.done.wait [#allocation3], 256  }
  0x23   :  { %164 = vsyncadd [#allocation3], 4294967040 }
  0x24   :  { %165 = dma.done.wait [#allocation6], 256  }
  0x25   :  { %166 = vsyncadd [#allocation6], 4294967040  ;;  %v57_v0 = vld [vmem:[#allocation2] sm:$0xff]  ;;  %v61_v1 = vld [vmem:[#allocation5] sm:$0xff]  ;;  %s171_s4 = smov [#allocation7]  }
  0x26   :  { %v58_v2 = vld [vmem:[#allocation2 + $0x8] sm:$0xff]  ;;  %v63_v3 = vmul.f32 %v61_v1, %v57_v0  ;;  %v62_v4 = vld [vmem:[#allocation5 + $0x8] sm:$0xff]  ;;  %s83_s5 = sshll.u32 %s171_s4, 4  ;;  %s84_s5 = int_to_ptr.vmem [resolvable:$true] %s83_s5 }
  0x27   :  { %v64_v5 = vmul.f32 %v62_v4, %v58_v2  ;;  %s141_s1 = scalar_lea.vmem %s84_s5, 256  ;;  %p146_p3 = scmp.lt.s32.totalorder %s84_s5, %s84_s5 }
  0x28   :  { %v65_v6 = vsub.f32 1.0, %v63_v3  ;;  %p142_p2 = scmp.ne.s32.totalorder %s84_s5, %s141_s1  ;;  %p147_p4 = scmp.lt.s32.totalorder %s141_s1, %s141_s1 }
  0x29   :  { %v66_v7 = vsub.f32 1.0, %v64_v5 }
  0x2a   :  { %v67_v8 = vmax.f32 %v65_v6, 0.0  ;;  %p148_p5 = por %p147_p4, %p146_p3 }
  0x2b   :  { %v68_v9 = vmax.f32 %v66_v7, 0.0 }
  0x2c   :  { %75 = vst [vmem:[#allocation7] sm:$0xff] %v67_v8  ;;  %p149_p6 = pnand %p148_p5, %p142_p2 }
  0x2d   :  { %76 = vst [vmem:[#allocation7 + $0x8] sm:$0xff] %v68_v9 }
  0x2e   :  { %152 = shalt.err (!%p149_p6)
}
  0x2f   :  { %s153_s8 = scalar_lea.hbm %s225_s2, 256 }
  0x30   :  { %p154_p7 = scmp.ne.s32.totalorder %s225_s2, %s153_s8  ;;  %p157_p8 = scmp.lt.u32.totalorder %s153_s8, %s225_s2 }
  0x32   :  { %p159_p9 = pnand %p157_p8, %p154_p7 }
  0x34   :  { %162 = shalt.err (!%p159_p9)
}
  0x35   :  { %86 = dma.vmem_to_hbm [thread:$0]  %s84_s5, 256, %s225_s2, [#allocation4]  }
  0x36   :  { %167 = dma.done.wait [#allocation4], 256  }
  0x37   :  { %168 = vsyncadd [#allocation4], 4294967040 }
  0x38   :  { %90 = vsyncpa [#allocation3], 1 }
  0x39   :  { %91 = vsyncpa [#allocation6], 1 }
  0x3a   :  { %92 = vsyncpa [#allocation4], 1 }

</bundles_post_ra>
